<compile_context>
chip_gen: v7x
topology: tpu7x:2x2x1
jax: 0.10.0
libtpu: 0.0.40
codegen_flags: <defaults>
</compile_context>

<pallas_src>
import numpy as np
import jax
import jax.numpy as jnp
from jax.experimental import pallas as pl
from jax.experimental.pallas import tpu as pltpu

_SQRT_2_OVER_PI = 0.7978845608028654


def _gelu_tanh(x_f32):
    # PyTorch aten.gelu(approximate='tanh')
    return 0.5 * x_f32 * (1.0 + jnp.tanh(
        _SQRT_2_OVER_PI * (x_f32 + 0.044715 * x_f32 * x_f32 * x_f32)))


def prepare_expert_weights(w1, w2):
    """One-time lane-dense re-layout, hoisted out of the forward pass.

    w1: (E, F, H) -> w1t: (E, H, F)   so  h   = x @ w1t[e]
    w2: (E, H, F) -> w2t: (E, F, H)   so  out = g @ w2t[e]
    """
    return jnp.transpose(w1, (0, 2, 1)), jnp.transpose(w2, (0, 2, 1))


def _vmem_limit_bytes():
    """Scoped-VMEM budget: physical capacity minus headroom for Mosaic scratch."""
    try:
        cap = pltpu.get_tpu_info().vmem_capacity_bytes
    except Exception:
        cap = None
    if not cap or cap <= 0:
        cap = 64 * 1024 * 1024      # most conservative (v7x per-TC physical VMEM)
    # Leave >=16 MiB headroom for internal scratch / semaphores / double buffers;
    # never claim the full 64 MiB on v7x, cap at 112 MiB on v5e/v6e.
    return max(32 * 1024 * 1024, min(cap - 16 * 1024 * 1024, 112 * 1024 * 1024))


def _choose_tiles(splits, H, F, vmem_limit, target_tile_m):
    """Pick (tile_m, f_tile) that hit the roofline knee and fit the VMEM budget."""
    f_cands = [c for c in (512, 256, 128) if F % c == 0]
    if not f_cands:
        f_cands = [F]                      # F already asserted lane-dense (128x)

    max_split = max(splits) if splits else 1
    # No point padding a small expert block up to a huge row tile.
    tile_m_hi = min(target_tile_m, max(128, -(-max_split // 128) * 128))

    def fits(tm, ft):
        multi_f = (F // ft) > 1
        x_b = 2 * tm * H * 2               # x row tile, double-buffered, bf16
        o_b = 2 * tm * H * 2               # out row tile, double-buffered, bf16
        a_b = tm * H * 4 if multi_f else 0  # f32 accumulator scratch
        w_b = 2 * 2 * (H * ft * 2)         # W1.T + W2.T chunks, double-buffered
        return (x_b + o_b + a_b + w_b) * 1.2 < vmem_limit

    for tm in range(tile_m_hi, 127, -128):
        for ft in f_cands:
            if fits(tm, ft):
                return tm, ft
    return 128, f_cands[-1]


def _make_kernel(num_f_tiles):
    def moe_fused_kernel(tile_expert_ref, x_ref, w1t_ref, w2t_ref, o_ref, *scratch):
        # x_ref:   (TILE_M, H)     bf16  expert-sorted row tile (resident across f)
        # w1t_ref: (1, H, F_TILE)  bf16  expert-selected W1.T chunk (scalar prefetch)
        # w2t_ref: (1, F_TILE, H)  bf16  expert-selected W2.T chunk
        # o_ref:   (TILE_M, H)     bf16  same block across f -> written on last f
        # scratch: optional (TILE_M, H) f32 accumulator (only when num_f_tiles > 1)
        del tile_expert_ref
        f = pl.program_id(1)

        # mlp1 over this F chunk: bf16 operands straight to the MXU, f32 accumulate.
        h = jnp.dot(x_ref[...], w1t_ref[0], preferred_element_type=jnp.float32)
        # Single f32->bf16 rounding of the intermediate (matches the PyTorch bf16
        # mlp1_outputs buffer); each h column's full H-reduction lives in one step.
        h = h.astype(jnp.bfloat16)

        # gelu(tanh) in f32 on the VPU/EUP, rounded once to bf16 (bf16 mlp2_inputs).
        g = _gelu_tanh(h.astype(jnp.float32)).astype(jnp.bfloat16)

        # mlp2 partial product for this F chunk (f32).
        partial = jnp.dot(g, w2t_ref[0], preferred_element_type=jnp.float32)

        if num_f_tiles == 1:
            # Whole F in one chunk: no accumulator scratch, single fused store.
            o_ref[...] = partial.astype(jnp.bfloat16)
        else:
            acc_ref = scratch[0]

            @pl.when(f == 0)
            def _():
                acc_ref[...] = partial

            @pl.when(jnp.logical_and(f > 0, f < num_f_tiles - 1))
            def _():
                acc_ref[...] = acc_ref[...] + partial

            @pl.when(f == num_f_tiles - 1)
            def _():
                # Fuse the last partial product with the store: saves one
                # (tile_m, H) f32 VMEM round-trip per row tile.
                o_ref[...] = (acc_ref[...] + partial).astype(jnp.bfloat16)

    return moe_fused_kernel


def moe_forward(x, w1t, w2t, splits, *, tile_m=None, f_tile=None,
                target_tile_m=512, vmem_limit_bytes=None):
    """Fused grouped expert MLP forward.

    x:   (N, H)    bf16, expert-sorted rows (N = B*S*K)
    w1t: (E, H, F) bf16, pre-transposed mlp1 weights (prepare_expert_weights)
    w2t: (E, F, H) bf16, pre-transposed mlp2 weights
    splits: host python list of per-expert token counts (ctx.splits_cpu analogue).

    Per-generation guidance for target_tile_m: v5e >=256, v6e 512-768, v7x 384-512.
    """
    N, H = x.shape
    E, H2, F = w1t.shape
    assert H2 == H and w2t.shape == (E, F, H)
    assert len(splits) == E and sum(splits) == N
    assert H % 128 == 0 and F % 128 == 0, "lane-dense H / F required"
    # TODO(synk): non-multiple-of-128 H/F would need padded weights or masked lanes.

    if N == 0 or max(splits) == 0:
        return jnp.zeros((N, H), dtype=jnp.bfloat16)

    if vmem_limit_bytes is None:
        vmem_limit_bytes = _vmem_limit_bytes()
    auto_tm, auto_ft = _choose_tiles(splits, H, F, vmem_limit_bytes, target_tile_m)
    if tile_m is None:
        tile_m = auto_tm
    if f_tile is None:
        f_tile = auto_ft
    assert tile_m % 128 == 0 and f_tile % 128 == 0 and F % f_tile == 0
    num_f_tiles = F // f_tile

    # Per-expert padding to multiples of tile_m so every row tile maps to exactly
    # one expert; pad rows alias row 0 and are simply dropped from the output.
    # Built with host-side index tables + a single gather on each side (no python
    # chain of slices / concatenates).
    # TODO(synk): fully copy-free indexing (scalar-prefetched row offsets with
    # unaligned/masked row-tile DMAs) would remove this extra activation pass.
    padded_splits = [-(-s // tile_m) * tile_m for s in splits]
    n_pad = sum(padded_splits)
    num_tiles = n_pad // tile_m

    src = np.zeros((n_pad,), dtype=np.int32)          # padded row -> source row
    dst = np.zeros((N,), dtype=np.int32)              # source row -> padded row
    tile_expert = np.zeros((num_tiles,), dtype=np.int32)
    off = poff = toff = 0
    for e, (s, ps) in enumerate(zip(splits, padded_splits)):
        if s > 0:
            src[poff:poff + s] = np.arange(off, off + s, dtype=np.int32)
            dst[off:off + s] = np.arange(poff, poff + s, dtype=np.int32)
        nt = ps // tile_m
        if nt > 0:
            tile_expert[toff:toff + nt] = e
        off += s
        poff += ps
        toff += nt

    x_pad = jnp.take(x, jnp.asarray(src), axis=0)

    scratch = [pltpu.VMEM((tile_m, H), jnp.float32)] if num_f_tiles > 1 else []

    grid_spec = pltpu.PrefetchScalarGridSpec(
        num_scalar_prefetch=1,
        grid=(num_tiles, num_f_tiles),
        in_specs=[
            pl.BlockSpec((tile_m, H), lambda i, f, te: (i, 0)),            # x row tile
            pl.BlockSpec((1, H, f_tile), lambda i, f, te: (te[i], 0, f)),  # W1.T chunk
            pl.BlockSpec((1, f_tile, H), lambda i, f, te: (te[i], f, 0)),  # W2.T chunk
        ],
        out_specs=pl.BlockSpec((tile_m, H), lambda i, f, te: (i, 0)),
        scratch_shapes=scratch,
    )

    cost = pl.CostEstimate(
        flops=4 * n_pad * H * F,                       # two matmuls
        transcendentals=n_pad * F,                     # tanh
        bytes_accessed=(2 * n_pad * H * 2              # x read + out write (bf16)
                        + num_tiles * 2 * H * F * 2),  # W1.T/W2.T streamed per row tile
    )

    out_pad = pl.pallas_call(
        _make_kernel(num_f_tiles),
        out_shape=jax.ShapeDtypeStruct((n_pad, H), jnp.bfloat16),
        grid_spec=grid_spec,
        compiler_params=pltpu.CompilerParams(
            dimension_semantics=("parallel", "arbitrary"),  # rows megacore-shardable
            vmem_limit_bytes=int(vmem_limit_bytes),
        ),
        cost_estimate=cost,
    )(jnp.asarray(tile_expert), x_pad, w1t, w2t)

    # Drop padding rows, restoring the original expert-sorted row order.
    return jnp.take(out_pad, jnp.asarray(dst), axis=0)


def moe_reference(x, w1, w2, splits):
    """Pure-JAX reference for the same grouped-MLP forward (original weight layout)."""
    outs = []
    off = 0
    for e, s in enumerate(splits):
        if s == 0:
            continue
        xe = x[off:off + s].astype(jnp.float32)
        h = (xe @ w1[e].astype(jnp.float32).T).astype(jnp.bfloat16)
        g = _gelu_tanh(h.astype(jnp.float32)).astype(jnp.bfloat16)
        o = (g.astype(jnp.float32) @ w2[e].astype(jnp.float32).T).astype(jnp.bfloat16)
        outs.append(o)
        off += s
    return jnp.concatenate(outs, axis=0)


if __name__ == "__main__":
    # Small shapes implied by the module: B=2, S=8, K=2 -> N = 32 tokens,
    # hidden H=128, ffn (model_dim) F=256, E=4 experts (lane-dense H/F).
    B, S, K = 2, 8, 2
    H, F, E = 128, 256, 4
    N = B * S * K
    splits = [8, 16, 0, 8]  # per-expert token counts (ctx.splits_cpu analogue)

    key = jax.random.PRNGKey(0)
    kx, k1, k2 = jax.random.split(key, 3)
    x = (jax.random.uniform(kx, (N, H), dtype=jnp.float32) * 0.01).astype(jnp.bfloat16)
    w1 = (jax.random.uniform(k1, (E, F, H), dtype=jnp.float32) * 0.01).astype(jnp.bfloat16)
    w2 = (jax.random.uniform(k2, (E, H, F), dtype=jnp.float32) * 0.01).astype(jnp.bfloat16)

    # One-time weight re-layout (hoisted out of the forward path / model init).
    w1t, w2t = prepare_expert_weights(w1, w2)
    w1t, w2t = jax.block_until_ready((w1t, w2t))

    ref = moe_reference(x, w1, w2, splits)

    # Default auto-tiled path (F fits in one chunk -> fused direct store, no scratch).
    out = jax.block_until_ready(moe_forward(x, w1t, w2t, splits))
    np.testing.assert_allclose(np.asarray(out, dtype=np.float32),
                               np.asarray(ref, dtype=np.float32),
                               rtol=2e-2, atol=2e-5)

    # Multi-F-chunk path (exercises the f32 accumulator + fused final store).
    out2 = jax.block_until_ready(moe_forward(x, w1t, w2t, splits, f_tile=128))
    np.testing.assert_allclose(np.asarray(out2, dtype=np.float32),
                               np.asarray(ref, dtype=np.float32),
                               rtol=2e-2, atol=2e-5)

    print("KERNEL_OK")
</pallas_src>

<mosaic_0001>
module attributes {stable_mosaic.version = 11 : i64} {
  func.func @moe_fused_kernel(%arg0: i32, %arg1: i32, %arg2: memref<3xi32, #tpu.memory_space<smem>>, %arg3: memref<128x128xbf16, #tpu.memory_space<vmem>>, %arg4: memref<1x128x256xbf16, #tpu.memory_space<vmem>>, %arg5: memref<1x256x128xbf16, #tpu.memory_space<vmem>>, %arg6: memref<128x128xbf16, #tpu.memory_space<vmem>>) attributes {dimension_semantics = [#tpu.dimension_semantics<parallel>, #tpu.dimension_semantics<arbitrary>], iteration_bounds = array<i64: 3, 1>, scalar_prefetch = 1 : i64, scratch_operands = 0 : i64, tpu.core_type = #tpu.core_type<tc>, window_params = [{transform_indices = @transform_0, window_bounds = array<i64: 128, 128>}, {transform_indices = @transform_1, window_bounds = array<i64: 1, 128, 256>}, {transform_indices = @transform_2, window_bounds = array<i64: 1, 256, 128>}, {transform_indices = @transform_3, window_bounds = array<i64: 128, 128>}]} {
    %c0 = arith.constant 0 : index
    %c0_0 = arith.constant 0 : index
    %0 = vector.load %arg3[%c0, %c0_0] : memref<128x128xbf16, #tpu.memory_space<vmem>>, vector<128x128xbf16>
    %c0_1 = arith.constant 0 : index
    %c0_2 = arith.constant 0 : index
    %c0_3 = arith.constant 0 : index
    %1 = vector.load %arg4[%c0_1, %c0_2, %c0_3] : memref<1x128x256xbf16, #tpu.memory_space<vmem>>, vector<1x128x256xbf16>
    %2 = vector.shape_cast %1 : vector<1x128x256xbf16> to vector<128x256xbf16>
    %cst = arith.constant dense<0.000000e+00> : vector<128x256xf32>
    %3 = tpu.matmul %0, %2, %cst {dimension_numbers = #tpu.dot_dimension_numbers<[1], [0], [0], [1], [0, 0, 1, 1], [], []>} : vector<128x128xbf16>, vector<128x256xbf16>, vector<128x256xf32> -> vector<128x256xf32>
    %4 = arith.truncf %3 : vector<128x256xf32> to vector<128x256xbf16>
    %5 = arith.extf %4 : vector<128x256xbf16> to vector<128x256xf32>
    %cst_4 = arith.constant 5.000000e-01 : f32
    %6 = vector.broadcast %cst_4 : f32 to vector<128x256xf32>
    %7 = arith.mulf %6, %5 : vector<128x256xf32>
    %cst_5 = arith.constant 4.471500e-02 : f32
    %8 = vector.broadcast %cst_5 : f32 to vector<128x256xf32>
    %9 = arith.mulf %8, %5 : vector<128x256xf32>
    %10 = arith.mulf %9, %5 : vector<128x256xf32>
    %11 = arith.mulf %10, %5 : vector<128x256xf32>
    %12 = arith.addf %5, %11 : vector<128x256xf32>
    %cst_6 = arith.constant 0.797884583 : f32
    %13 = vector.broadcast %cst_6 : f32 to vector<128x256xf32>
    %14 = arith.mulf %13, %12 : vector<128x256xf32>
    %15 = math.tanh %14 : vector<128x256xf32>
    %cst_7 = arith.constant 1.000000e+00 : f32
    %16 = vector.broadcast %cst_7 : f32 to vector<128x256xf32>
    %17 = arith.addf %16, %15 : vector<128x256xf32>
    %18 = arith.mulf %7, %17 : vector<128x256xf32>
    %19 = arith.truncf %18 : vector<128x256xf32> to vector<128x256xbf16>
    %c0_8 = arith.constant 0 : index
    %c0_9 = arith.constant 0 : index
    %c0_10 = arith.constant 0 : index
    %20 = vector.load %arg5[%c0_8, %c0_9, %c0_10] : memref<1x256x128xbf16, #tpu.memory_space<vmem>>, vector<1x256x128xbf16>
    %21 = vector.shape_cast %20 : vector<1x256x128xbf16> to vector<256x128xbf16>
    %cst_11 = arith.constant dense<0.000000e+00> : vector<128x128xf32>
    %22 = tpu.matmul %19, %21, %cst_11 {dimension_numbers = #tpu.dot_dimension_numbers<[1], [0], [0], [1], [0, 0, 1, 1], [], []>} : vector<128x256xbf16>, vector<256x128xbf16>, vector<128x128xf32> -> vector<128x128xf32>
    %23 = arith.truncf %22 : vector<128x128xf32> to vector<128x128xbf16>
    %c0_12 = arith.constant 0 : index
    %c0_13 = arith.constant 0 : index
    %24 = vector.load %arg6[%c0_12, %c0_13] : memref<128x128xbf16, #tpu.memory_space<vmem>>, vector<128x128xbf16>
    tpu.vector_store %arg6[%c0_12, %c0_13], %23 {strides = array<i32>} : memref<128x128xbf16, #tpu.memory_space<vmem>>, vector<128x128xbf16>,
    return
  }
  func.func @transform_0(%arg0: i32, %arg1: i32, %arg2: memref<3xi32, #tpu.memory_space<smem>>) -> (i32, i32) {
    %c0_i32 = arith.constant 0 : i32
    %c0_i32_0 = arith.constant 0 : i32
    return %arg0, %c0_i32 : i32, i32
  }
  func.func @transform_1(%arg0: i32, %arg1: i32, %arg2: memref<3xi32, #tpu.memory_space<smem>>) -> (i32, i32, i32) {
    %0 = arith.index_cast %arg0 : i32 to index
    %1 = memref.load %arg2[%0] : memref<3xi32, #tpu.memory_space<smem>>
    %c0_i32 = arith.constant 0 : i32
    %c0_i32_0 = arith.constant 0 : i32
    return %1, %c0_i32, %arg1 : i32, i32, i32
  }
  func.func @transform_2(%arg0: i32, %arg1: i32, %arg2: memref<3xi32, #tpu.memory_space<smem>>) -> (i32, i32, i32) {
    %0 = arith.index_cast %arg0 : i32 to index
    %1 = memref.load %arg2[%0] : memref<3xi32, #tpu.memory_space<smem>>
    %c0_i32 = arith.constant 0 : i32
    %c0_i32_0 = arith.constant 0 : i32
    return %1, %arg1, %c0_i32 : i32, i32, i32
  }
  func.func @transform_3(%arg0: i32, %arg1: i32, %arg2: memref<3xi32, #tpu.memory_space<smem>>) -> (i32, i32) {
    %c0_i32 = arith.constant 0 : i32
    %c0_i32_0 = arith.constant 0 : i32
    return %arg0, %c0_i32 : i32, i32
  }
}

</mosaic_0001>

<bundles_post_ra>
// kernel: tpu_custom_call.1
= control target key start
LH: loop header
LB: loop body
LE: loop exit
PB: predicated region body
PF: predicated region fallthrough
CT: control target
= control target key end

     0   :  { %s2806_s0 = inlined_call_operand.hbm [shape: s32[3], index: 0, kind: input, shape index: {}]   ;;  %s2807_s1 = inlined_call_operand.hbm [shape: bf16[384,128], index: 1, kind: input, shape index: {}]   ;;  %s2808_s2 = inlined_call_operand.hbm [shape: bf16[4,128,256], index: 2, kind: input, shape index: {}]   ;;  %s2809_s3 = inlined_call_operand.hbm [shape: bf16[4,256,128], index: 3, kind: input, shape index: {}]   ;;  %s2810_s4 = inlined_call_operand.hbm [shape: bf16[384,128], index: 4, kind: output, shape index: {}]  }
   0x1   :  { %2824 = sst [smem:[#allocation25_spill]] %s2808_s2  ;;  %s1833_s17 = scalar_lea.hbm %s2806_s0, 16 }
   0x2   :  { %2825 = sst [smem:[#allocation26_spill]] %s2810_s4  ;;  %p1834_p0 = scmp.ne.s32.totalorder %s2806_s0, %s1833_s17 }
   0x3   :  { %p1837_p1 = scmp.lt.u32.totalorder %s1833_s17, %s2806_s0 }
   0x5   :  { %p1839_p2 = pnand %p1837_p1, %p1834_p0 }
   0x7   :  { %1842 = shalt.err (!%p1839_p2)  }
   0x8   :  { %s2075_s22 = smov [#allocation3]  }
   0x9   :  { %10 = dma.hbm_to_smem %s2806_s0, 16, %s2075_s22, [#allocation2] }
   0xa   :  { %2009 = dma.done.wait [#allocation2], 16 }
   0xb   :  { %2010 = vsyncadd [#allocation2], 4294967280 }
   0xc   :  { %12 = sfence }
   0xd   :  { %13 = vsyncpa [#allocation5], 0 }
   0xe   :  { %15 = vsyncpa [#allocation5 + $0x1], 0 }
   0xf   :  { %16 = vsyncpa [#allocation8], 0 }
  0x10   :  { %18 = vsyncpa [#allocation8 + $0x1], 0 }
  0x11   :  { %19 = vsyncpa [#allocation6], 0 }
  0x12   :  { %21 = vsyncpa [#allocation6 + $0x1], 0  ;;  %s2124_s25 = smov 0   ;;  %s2126_s26 = smov 0  }
  0x13   :  { %s2128_s27 = smov 0   ;;  %s2130_s28 = smov 0  }
  0x14   :  { %s2132_s29 = smov 0   ;;  %s2134_s0 = smov 0  }
  0x15   :  { %s2136_s30 = smov 0   ;;  %s2138_s5 = smov 0  }
  0x16   :  { %s2140_s6 = smov 0   ;;  %s2142_s7 = smov 0  }
  0x17   :  { %s2144_s8 = smov 0   ;;  %s2146_s9 = smov 0  }
  0x18 LB: > { %2826 = sst [smem:[#allocation20_spill]] %s2049_s0  ;;  %s2183_s10 = sadd.s32 4294967295, %s2073_s9   ;;  %s2073_s9 = sphi %s2146_s9, %s27_s9   ;;  %s2069_s8 = sphi %s2144_s8, %s2871_s8   ;;  %s2065_s7 = sphi %s2142_s7, %s2870_s7   ;;  %s2061_s6 = sphi %s2140_s6, %s2862_s6   ;;  %s2057_s5 = sphi %s2138_s5, %s2869_s5   ;;  %s2053_s30 = sphi %s2136_s30, %s2868_s30   ;;  %s2049_s0 = sphi %s2134_s0, %s2860_s0   ;;  %s2045_s29 = sphi %s2132_s29, %s2867_s29   ;;  %s2041_s28 = sphi %s2130_s28, %s2866_s28   ;;  %s2037_s27 = sphi %s2128_s27, %s2865_s27   ;;  %s2033_s26 = sphi %s2126_s26, %s2864_s26   ;;  %s2029_s25 = sphi %s2124_s25, %s2863_s25  }
  0x19   : > { %2827 = sst [smem:[#allocation21_spill]] %s2061_s6  ;;  %s39_s11 = sadd.s32 1, %s2069_s8 }
  0x1a   : > { %p41_p3 = scmp.ge.s32.totalorder %s39_s11, 3  ;;  %p2814_p4 = scmp.eq.s32.totalorder %s2073_s9, 0 }
  0x1b   : > { %p2813_p5 = scmp.eq.s32.totalorder %s2183_s10, 0  ;;  %s69_s12 = sld [smem:[#allocation3 + %s2069_s8]] }
  0x1c   : > { %s2873_s11 = smov (%p41_p3, %s39_s11), 0  ;;  %s76_s13 = sadd.s32 1, %s2049_s0 }
  0x1d   : > { %p83_p6 = scmp.ne.s32.totalorder %s2049_s0, %s2045_s29  ;;  %s70_s14 = sld [smem:[#allocation3 + %s2873_s11]] }
  0x1e   : > { %p89_p7 = scmp.ne.s32.totalorder %s2045_s29, %s2041_s28  ;;  %p2812_p10 = scmp.lt.s32.totalorder %s2073_s9, 3 }
  0x1f   : > { %p2198_p8 = por %p83_p6, %p2814_p4  ;;  %s190_s17 = sand.u32 1, %s2073_s9  }
  0x20   : > { %p2204_p9 = por %p89_p7, %p2813_p5  ;;  %s192_s18 = sand.u32 1, %s2049_s0  }
  0x21   : > { %s1382_s19 = sshll.u32 %s192_s18, 7  ;;  %p2215_p11 = pnand %p2812_p10, %p2198_p8 }
  0x22   : > { %s2829_s16 = scalar_select %p2204_p9, 1, 0 }
  0x23   : > { %s71_s21 = ssub.s32 %s69_s12, %s70_s14  ;;  %s194_s22 = scalar_lea.vmem [#allocation7], %s1382_s19 }
  0x24   : > { %s204_s23 = sshll.u32 %s194_s22, 4  ;;  %p74_p12 = scmp.eq.s32.totalorder %s71_s21, 0  ;;  %s2219_s23 = int_to_ptr.vmem [resolvable:$true] %s204_s23 }
  0x25   : > { %s1586_s24 = scalar_select %p2198_p8, [#allocation3], [#allocation11] }
  0x26   : > { %s2224_s28 = scalar_select %p74_p12, %s2049_s0, %s76_s13  }
  0x27   : > { %s1587_s18 = scalar_select %p2198_p8, %s2069_s8, 0 }
  0x28   : > { %2831 = sst [smem:[#allocation22_spill]] %s2224_s28  ;;  %s2875_s24 = smov (!%p2812_p10, %s1586_s24), [#allocation13] }
  0x29   : > { %s2877_s18 = smov (!%p2812_p10, %s1587_s18), 0  ;;  %p1388_p13 = scmp.ge.s32.totalorder %s2073_s9, 1 }
  0x2a   : > { %s195_s4 = sld [smem:[%s2875_s24 + %s2877_s18]]  ;;  %p236_p0 = scmp.lt.s32.totalorder %s2073_s9, 4 }
  0x2b   : > { %s2833_s2 = sld [smem:[#allocation25_spill]]  ;;  %s1376_s13 = sadd.s32 4294967294, %s2073_s9  }
  0x2c   : > { %p2235_p1 = pnand %p1388_p13, %p236_p0  ;;  %s2245_s15 = scalar_lea.sflag [#allocation8], %s190_s17 }
  0x2d   : > { %p1845_p3 = pneg %p2215_p11 }
  0x30   : > { %s1455_s14 = sshll.u32 %s195_s4, 11 }
  0x31   : > { %s2242_s22 = scalar_lea.hbm %s2833_s2, %s1455_s14  ;;  %s1848_s14 = scalar_lea.hbm %s2833_s2, 8192 }
  0x32   : > { %s1843_s24 = scalar_lea.hbm %s2242_s22, 2048  ;;  %p1849_p8 = scmp.lt.u32.totalorder %s2242_s22, %s2833_s2 }
  0x33   : > { %p1844_p2 = scmp.ne.s32.totalorder %s2242_s22, %s1843_s24  ;;  %p1850_p12 = scmp.lt.u32.totalorder %s1848_s14, %s1843_s24 }
  0x34   : > { %p1852_p0 = scmp.lt.u32.totalorder %s1843_s24, %s2242_s22 }
  0x35   : > { %p1846_p6 = pnand %p1845_p3, %p1844_p2  ;;  %p1851_p13 = por %p1850_p12, %p1849_p8 }
  0x37   : > { %p1847_p7 = pneg %p1846_p6  ;;  %p1853_p10 = por %p1852_p0, %p1851_p13 }
  0x39   : > { %p1854_p5 = pnand %p1853_p10, %p1847_p7 }
  0x3b   : > { %1857 = shalt.err (!%p1854_p5)
}
  0x3c   : > { %s1858_s17 = scalar_lea.vmem %s2219_s23, 2048  ;;  %s2076_s4 = smov [#allocation7]  }
  0x3d   : > { %p1859_p2 = scmp.ne.s32.totalorder %s2219_s23, %s1858_s17  ;;  %s1863_s18 = sshll.u32 %s2076_s4, 4  ;;  %s1864_s18 = int_to_ptr.vmem [resolvable:$false] %s1863_s18 }
  0x3e   : > { %s1865_s19 = scalar_lea.vmem %s1864_s18, 4096  ;;  %p1866_p9 = scmp.lt.s32.totalorder %s2219_s23, %s1864_s18 }
  0x3f   : > { %p1861_p6 = pnand %p1859_p2, %p1845_p3  ;;  %p1867_p8 = scmp.lt.s32.totalorder %s1865_s19, %s1858_s17 }
  0x41   : > { %p1862_p4 = pneg %p1861_p6  ;;  %p1868_p12 = por %p1867_p8, %p1866_p9 }
  0x43   : > { %p1869_p13 = pnand %p1868_p12, %p1862_p4 }
  0x45   : > { %1872 = shalt.err (!%p1869_p13)
}
  0x46   : > { %s2077_s24 = smov 128   ;;  %s2078_s14 = smov 8  }
  0x47   : > { %1605 = dma.hbm_to_vmem [thread:$0]  (!%p2215_p11), %s2242_s22, 2048, %s2219_s23, %s2245_s15, %s2077_s24, %s2077_s24, %s2078_s14  }
  0x48   : > { %s43_s21 = ssub.s32 %s2069_s8, %s2873_s11  ;;  %s46_s17 = sadd.s32 1, %s2061_s6 }
  0x49   : > { %p44_p4 = scmp.eq.s32.totalorder %s43_s21, 0  ;;  %p53_p5 = scmp.ne.s32.totalorder %s2061_s6, %s2057_s5 }
  0x4a   : > { %p59_p9 = scmp.ne.s32.totalorder %s2057_s5, %s2053_s30  ;;  %p143_p10 = scmp.eq.s32.totalorder %s2183_s10, 2 }
  0x4b   : > { %s2282_s4 = scalar_select %p44_p4, %s2061_s6, %s46_s17  }
  0x4c   : > { %p2835_p3 = scmp.eq.s32.totalorder %s2073_s9, 0  ;;  %p2836_p0 = scmp.eq.s32.totalorder %s2183_s10, 0 }
  0x4d   : > { %2834 = sst [smem:[#allocation23_spill]] %s2282_s4  ;;  %p2292_p6 = por %p143_p10, %p53_p5 }
  0x4e   : > { %p55_p7 = por %p2835_p3, %p53_p5  ;;  %p2288_p2 = por %p2836_p0, %p59_p9 }
  0x4f   : > { %s2838_s19 = scalar_select %p2292_p6, 1, 0 }
  0x50   : > { %s2837_s18 = scalar_select %p2288_p2, 1, 0 }
  0x51   : > { %p149_p11 = scmp.eq.s32.totalorder %s1376_s13, 2  ;;  %s169_s20 = sand.u32 1, %s2061_s6  }
  0x52   : > { %s1454_s23 = sshll.u32 %s2069_s8, 10  ;;  %s1379_s24 = sshll.u32 %s169_s20, 6 }
  0x53   : > { %p2300_p8 = por %p149_p11, %p59_p9  ;;  %s2307_s17 = scalar_lea.hbm %s2807_s1, %s1454_s23 }
  0x54   : > { %p2841_p12 = scmp.lt.s32.totalorder %s2073_s9, 3  ;;  %s173_s13 = scalar_lea.vmem [#allocation4], %s1379_s24 }
  0x55   : > { %s2839_s22 = scalar_select %p2300_p8, 1, 0 }
  0x56   : > { %p2311_p13 = pnand %p2841_p12, %p55_p7  ;;  %s180_s4 = sshll.u32 %s173_s13, 4  ;;  %s2315_s4 = int_to_ptr.vmem [resolvable:$true] %s180_s4 }
  0x57   : > { %2840 = sst [smem:[#allocation24_spill]] %s2839_s22  ;;  %s2317_s6 = scalar_lea.sflag [#allocation5], %s169_s20 }
  0x58   : > { %s1873_s14 = scalar_lea.hbm %s2307_s17, 1024  ;;  %p1875_p5 = pneg %p2311_p13 }
  0x59   : > { %p1874_p4 = scmp.ne.s32.totalorder %s2307_s17, %s1873_s14  ;;  %s1878_s28 = scalar_lea.hbm %s2807_s1, 3072 }
  0x5a   : > { %p1879_p3 = scmp.lt.u32.totalorder %s2307_s17, %s2807_s1  ;;  %p1880_p7 = scmp.lt.u32.totalorder %s1878_s28, %s1873_s14 }
  0x5b   : > { %p1876_p9 = pnand %p1875_p5, %p1874_p4  ;;  %p1882_p11 = scmp.lt.u32.totalorder %s1873_s14, %s2307_s17 }
  0x5c   : > { %p1881_p0 = por %p1880_p7, %p1879_p3 }
  0x5d   : > { %p1877_p10 = pneg %p1876_p9 }
  0x5e   : > { %p1883_p12 = por %p1882_p11, %p1881_p0 }
  0x60   : > { %p1884_p8 = pnand %p1883_p12, %p1877_p10 }
  0x62   : > { %1887 = shalt.err (!%p1884_p8)
}
  0x63   : > { %s1888_s20 = scalar_lea.vmem %s2315_s4, 1024  ;;  %s2079_s24 = smov [#allocation4]  }
  0x64   : > { %p1889_p4 = scmp.ne.s32.totalorder %s2315_s4, %s1888_s20  ;;  %s1893_s13 = sshll.u32 %s2079_s24, 4  ;;  %s1894_s13 = int_to_ptr.vmem [resolvable:$false] %s1893_s13 }
  0x65   : > { %s1895_s0 = scalar_lea.vmem %s1894_s13, 2048  ;;  %p1896_p2 = scmp.lt.s32.totalorder %s2315_s4, %s1894_s13 }
  0x66   : > { %p1891_p9 = pnand %p1889_p4, %p1875_p5  ;;  %p1897_p3 = scmp.lt.s32.totalorder %s1895_s0, %s1888_s20 }
  0x68   : > { %p1892_p6 = pneg %p1891_p9  ;;  %p1898_p7 = por %p1897_p3, %p1896_p2 }
  0x6a   : > { %p1899_p0 = pnand %p1898_p7, %p1892_p6 }
  0x6c   : > { %1902 = shalt.err (!%p1899_p0)
}
  0x6d   : > { %s2821_s28 = smov 64   ;;  %s2822_s22 = smov 4  }
  0x6e   : > { %1600 = dma.hbm_to_vmem [thread:$0]  (!%p2311_p13), %s2307_s17, 1024, %s2315_s4, %s2317_s6, %s2821_s28, %s2821_s28, %s2822_s22  }
  0x6f   : > { %s99_s14 = sld [smem:[#allocation3 + %s2069_s8]]  ;;  %p113_p2 = scmp.ne.s32.totalorder %s2037_s27, %s2033_s26 }
  0x70   : > { %s100_s23 = sld [smem:[#allocation3 + %s2873_s11]]  ;;  %p119_p6 = scmp.ne.s32.totalorder %s2033_s26, %s2029_s25 }
  0x71   : > { %p2843_p8 = scmp.eq.s32.totalorder %s2183_s10, 0  ;;  %s216_s20 = sand.u32 1, %s2037_s27  }
  0x72   : > { %p2845_p10 = scmp.eq.s32.totalorder %s2073_s9, 0  ;;  %s106_s2 = sadd.s32 1, %s2037_s27 }
  0x73   : > { %p2356_p5 = por %p119_p6, %p2843_p8  ;;  %s1385_s13 = sshll.u32 %s216_s20, 7 }
  0x74   : > { %p115_p11 = por %p113_p2, %p2845_p10  ;;  %p2846_p4 = scmp.lt.s32.totalorder %s2073_s9, 3 }
  0x75   : > { %s2844_s21 = scalar_select %p2356_p5, 1, 0 }
  0x76   : > { %s101_s24 = ssub.s32 %s99_s14, %s100_s23  ;;  %p2366_p13 = pnand %p2846_p4, %p115_p11 }
  0x77   : > { %p104_p12 = scmp.eq.s32.totalorder %s101_s24, 0  ;;  %p2848_p9 = pmov %p2846_p4 }
  0x78   : > { %s1589_s25 = scalar_select %p115_p11, [#allocation3], [#allocation12] }
  0x79   : > { %s2371_s4 = scalar_select %p104_p12, %s2037_s27, %s106_s2  }
  0x7a   : > { %s1590_s17 = scalar_select %p115_p11, %s2069_s8, 0 }
  0x7b   : > { %s2879_s25 = smov (!%p2848_p9, %s1589_s25), [#allocation14]  ;;  %p2849_p3 = pmov %p2846_p4 }
  0x7c   : > { %s218_s28 = scalar_lea.vmem [#allocation9], %s1385_s13  ;;  %p1905_p0 = pneg %p2366_p13 }
  0x7d   : > { %s2881_s17 = smov (!%p2849_p3, %s1590_s17), 0  ;;  %s228_s14 = sshll.u32 %s218_s28, 4  ;;  %s2378_s14 = int_to_ptr.vmem [resolvable:$true] %s228_s14 }
  0x7e   : > { %s219_s0 = sld [smem:[%s2879_s25 + %s2881_s17]]  ;;  %s1908_s25 = scalar_lea.hbm %s2809_s3, 8192 }
  0x84   : > { %s1456_s23 = sshll.u32 %s219_s0, 11 }
  0x85   : > { %s2383_s22 = scalar_lea.hbm %s2809_s3, %s1456_s23 }
  0x86   : > { %s1903_s2 = scalar_lea.hbm %s2383_s22, 2048  ;;  %p1909_p8 = scmp.lt.u32.totalorder %s2383_s22, %s2809_s3 }
  0x87   : > { %p1904_p7 = scmp.ne.s32.totalorder %s2383_s22, %s1903_s2  ;;  %p1910_p10 = scmp.lt.u32.totalorder %s1908_s25, %s1903_s2 }
  0x88   : > { %p1912_p12 = scmp.lt.u32.totalorder %s1903_s2, %s2383_s22 }
  0x89   : > { %p1906_p2 = pnand %p1905_p0, %p1904_p7  ;;  %p1911_p11 = por %p1910_p10, %p1909_p8 }
  0x8b   : > { %p1907_p6 = pneg %p1906_p2  ;;  %p1913_p4 = por %p1912_p12, %p1911_p11 }
  0x8d   : > { %p1914_p9 = pnand %p1913_p4, %p1907_p6 }
  0x8f   : > { %1917 = shalt.err (!%p1914_p9)
}
  0x90   : > { %s1918_s23 = scalar_lea.vmem %s2378_s14, 2048  ;;  %s2082_s20 = smov [#allocation9]  }
  0x91   : > { %p1919_p3 = scmp.ne.s32.totalorder %s2378_s14, %s1918_s23  ;;  %s1923_s24 = sshll.u32 %s2082_s20, 4  ;;  %s1924_s24 = int_to_ptr.vmem [resolvable:$false] %s1923_s24 }
  0x92   : > { %s1925_s28 = scalar_lea.vmem %s1924_s24, 4096  ;;  %p1926_p5 = scmp.lt.s32.totalorder %s2378_s14, %s1924_s24 }
  0x93   : > { %p1921_p7 = pnand %p1919_p3, %p1905_p0  ;;  %p1927_p8 = scmp.lt.s32.totalorder %s1925_s28, %s1918_s23 }
  0x95   : > { %p1922_p2 = pneg %p1921_p7  ;;  %p1928_p10 = por %p1927_p8, %p1926_p5 }
  0x97   : > { %p1929_p11 = pnand %p1928_p10, %p1922_p2 }
  0x99   : > { %1932 = shalt.err (!%p1929_p11)
}
  0x9a   : > { %s2850_s2 = smov 4   ;;  %s2851_s13 = smov 64  }
  0x9b   : > { %1610 = dma.hbm_to_vmem [thread:$0]  (!%p2366_p13), %s2383_s22, 2048, %s2378_s14, %s2245_s15, %s2851_s13, %s2851_s13, %s2850_s2  }
  0x9c   : > { %240 = sbr.rel (%p2235_p1) target bundleno = 762 (0x2fa), region = 32  ;;  %s2417_s25 = sand.u32 (!%p2235_p1), 1, %s2057_s5  }
  0x9d   : > { %s1389_s17 = sshll.u32 (!%p2235_p1), %s2417_s25, 6  ;;  %s243_s0 = scalar_lea.sflag (!%p2235_p1), [#allocation5], %s2417_s25 }
  0x9e   : > { %s2423_s6 = scalar_lea.vmem (!%p2235_p1), [#allocation4], %s1389_s17  ;;  %p2852_p5 = scmp.ne.s32.totalorder (!%p2235_p1), %s2837_s18, 0 }
  0xa3   : > { %2012 = dma.done.wait (%p2852_p5), %s243_s0, 1024  }
  0xa4   : > { %2014 = vsyncadd (%p2852_p5), %s243_s0, 4294966272  ;;  %s251_s12 = sand.u32 1, %s2183_s10   ;;  %s253_s15 = sand.u32 1, %s2045_s29  }
  0xa5   : > { %s1390_s22 = sshll.u32 %s253_s15, 7  ;;  %s252_s14 = scalar_lea.sflag [#allocation8], %s251_s12 }
  0xa6   : > { %s2431_s23 = scalar_lea.vmem [#allocation7], %s1390_s22  ;;  %p2853_p1 = scmp.ne.s32.totalorder %s2829_s16, 0 }
  0xa8   : > { %2016 = dma.done.wait (%p2853_p1), %s252_s14, 2048  }
  0xa9   : > { %2018 = vsyncadd (%p2853_p1), %s252_s14, 4294965248  ;;  %s262_s20 = sand.u32 1, %s2033_s26   ;;  %p2854_p13 = scmp.ne.s32.totalorder %s2844_s21, 0 }
  0xaa   : > { %s1391_s24 = sshll.u32 %s262_s20, 7 }
  0xab   : > { %s2438_s18 = scalar_lea.vmem [#allocation9], %s1391_s24 }
  0xac   : > { %2020 = dma.done.wait (%p2854_p13), %s252_s14, 2048  }
  0xad   : > { %2022 = vsyncadd (%p2854_p13), %s252_s14, 4294965248  ;;  %v2083_v0 = vmov 0   ;;  %v1721_v1 = vld [vmem:[%s2431_s23 + $0x4] ss:$8 sps:$4 sm:$0xff]   ;;  %v1723_v2 = vld [vmem:[%s2431_s23] ss:$8 sps:$4 sm:$0xff]  }
  0xae   : > { %496 = vmatprep.mubr.bf16.mxu0 %v2083_v0  ;;  %464 = vmatprep.subr.bf16.mxu0 %v1721_v1  ;;  %v1724_v3 = vld [vmem:[%s2431_s23 + $0x14] ss:$8 sps:$4 sm:$0xff]   ;;  %v1726_v4 = vld [vmem:[%s2431_s23 + $0x10] ss:$8 sps:$4 sm:$0xff]   ;;  %v1727_v5 = vld [vmem:[%s2431_s23 + $0x24] ss:$8 sps:$4 sm:$0xff]  }
  0xaf   : > { %465 = vmatpush1.bf16.msra.mxu0 %v1723_v2  ;;  %v1729_v6 = vld [vmem:[%s2431_s23 + $0x20] ss:$8 sps:$4 sm:$0xff]   ;;  %v1730_v7 = vld [vmem:[%s2431_s23 + $0x34] ss:$8 sps:$4 sm:$0xff]   ;;  %v1732_v8 = vld [vmem:[%s2431_s23 + $0x30] ss:$8 sps:$4 sm:$0xff]  }
  0xb0   : > { %466 = vmatprep.subr.bf16.mxu0 %v1724_v3  ;;  %v1733_v9 = vld [vmem:[%s2431_s23 + $0x44] ss:$8 sps:$4 sm:$0xff]   ;;  %v1735_v10 = vld [vmem:[%s2431_s23 + $0x40] ss:$8 sps:$4 sm:$0xff]   ;;  %v1736_v11 = vld [vmem:[%s2431_s23 + $0x54] ss:$8 sps:$4 sm:$0xff]  }
  0xb1   : > { %v1738_v12 = vld [vmem:[%s2431_s23 + $0x50] ss:$8 sps:$4 sm:$0xff]   ;;  %v1739_v13 = vld [vmem:[%s2431_s23 + $0x64] ss:$8 sps:$4 sm:$0xff]   ;;  %v1741_v14 = vld [vmem:[%s2431_s23 + $0x60] ss:$8 sps:$4 sm:$0xff]  }
  0xb2   : > { %v1742_v15 = vld [vmem:[%s2431_s23 + $0x74] ss:$8 sps:$4 sm:$0xff]   ;;  %v1744_v16 = vld [vmem:[%s2431_s23 + $0x70] ss:$8 sps:$4 sm:$0xff]   ;;  %v1745_v17 = vld [vmem:[%s2423_s6] sm:$0xff]   ;;  %s2723_s10 = scalar_lea.vmem [#allocation10], %s1389_s17 }
  0xb3   : > { %467 = vmatpush1.bf16.msra.mxu0 %v1726_v4  ;;  %v1746_v18 = vld [vmem:[%s2423_s6 + $0x8] sm:$0xff]   ;;  %v1747_v19 = vld [vmem:[%s2423_s6 + $0x10] sm:$0xff]   ;;  %v1748_v20 = vld [vmem:[%s2423_s6 + $0x18] sm:$0xff]   ;;  %s1248_s16 = sshll.u32 %s2723_s10, 4  ;;  %s1473_s21 = sshll.u32 %s2065_s7, 10  ;;  %s2734_s16 = int_to_ptr.vmem [resolvable:$true] %s1248_s16 }
  0xb4   : > { %468 = vmatprep.subr.bf16.mxu0 %v1727_v5  ;;  %v1749_v21 = vld [vmem:[%s2423_s6 + $0x20] sm:$0xff]   ;;  %v1750_v22 = vld [vmem:[%s2423_s6 + $0x28] sm:$0xff]   ;;  %v1751_v23 = vld [vmem:[%s2423_s6 + $0x30] sm:$0xff]   ;;  %s2855_s13 = sld [smem:[#allocation26_spill]]  ;;  %s1235_s0 = scalar_lea.sflag [#allocation6], %s2417_s25 }
  0xb5   : > { %v1752_v24 = vld [vmem:[%s2423_s6 + $0x38] sm:$0xff]   ;;  %v1753_v25 = vld [vmem:[%s2438_s18 + $0x40] sm:$0xff]   ;;  %v1755_v27 = vld [vmem:[%s2438_s18 + $0x48] sm:$0xff]   ;;  %s1933_s6 = scalar_lea.vmem %s2734_s16, 1024  ;;  %p2856_p6 = scmp.ne.s32.totalorder %s2838_s19, 0 }
  0xb6   : > { %v1754_v26 = vld [vmem:[%s2438_s18] sm:$0xff]   ;;  %1521 = vmatprep.subr.bf16.mxu1 %v1753_v25  ;;  %v1756_v28 = vld [vmem:[%s2438_s18 + $0x8] sm:$0xff]   ;;  %v1757_v29 = vld [vmem:[%s2438_s18 + $0x50] sm:$0xff]   ;;  %p1934_p0 = scmp.ne.s32.totalorder %s2734_s16, %s1933_s6  ;;  %s2084_s7 = smov [#allocation10]  }
  0xb7   : > { %469 = vmatpush1.bf16.msra.mxu0 %v1729_v6  ;;  %1522 = vmatpush3.bf16.msra.mxu1 %v1754_v26  ;;  %v1758_v30 = vld [vmem:[%s2438_s18 + $0x10] sm:$0xff]   ;;  %v1759_v31 = vld [vmem:[%s2438_s18 + $0x58] sm:$0xff]   ;;  %v1761_v33 = vld [vmem:[%s2438_s18 + $0x60] sm:$0xff]   ;;  %s1937_s12 = sshll.u32 %s2084_s7, 4  ;;  %s1938_s12 = int_to_ptr.vmem [resolvable:$false] %s1937_s12 }
  0xb8   : > { %470 = vmatprep.subr.bf16.mxu0 %v1730_v7  ;;  %1523 = vmatprep.subr.bf16.mxu1 %v1755_v27  ;;  %v1760_v32 = vld [vmem:[%s2438_s18 + $0x18] sm:$0xff]   ;;  %v1762_v34 = vld [vmem:[%s2438_s18 + $0x20] sm:$0xff]   ;;  %v1763_v35 = vld [vmem:[%s2438_s18 + $0x68] sm:$0xff]   ;;  %p1935_p12 = pnand %p1934_p0, %p2856_p6  ;;  %s1939_s15 = scalar_lea.vmem %s1938_s12, 2048 }
  0xb9   : > { %v1764_v36 = vld [vmem:[%s2438_s18 + $0x28] sm:$0xff]   ;;  %v1765_v37 = vld [vmem:[%s2438_s18 + $0x70] sm:$0xff]   ;;  %v1767_v39 = vld [vmem:[%s2438_s18 + $0x78] sm:$0xff]   ;;  %p1940_p9 = scmp.lt.s32.totalorder %s2734_s16, %s1938_s12  ;;  %p1941_p3 = scmp.lt.s32.totalorder %s1939_s15, %s1933_s6 }
  0xba   : > { %v1766_v38 = vld [vmem:[%s2438_s18 + $0x30] sm:$0xff]   ;;  %v1768_v40 = vld [vmem:[%s2438_s18 + $0x38] sm:$0xff]   ;;  %s2739_s17 = scalar_lea.hbm %s2855_s13, %s1473_s21  ;;  %p1936_p4 = pneg %p1935_p12 }
  0xbb   : > { %471 = vmatpush1.bf16.msra.mxu0 %v1732_v8  ;;  %1524 = vmatpush3.bf16.msra.mxu1 %v1756_v28  ;;  %p1942_p7 = por %p1941_p3, %p1940_p9 }
  0xbc   : > { %472 = vmatprep.subr.bf16.mxu0 %v1733_v9  ;;  %1525 = vmatprep.subr.bf16.mxu1 %v1757_v29 }
  0xbd   : > { %p1943_p2 = pnand %p1942_p7, %p1936_p4 }
  0xbf   : > { %473 = vmatpush1.bf16.msra.mxu0 %v1735_v10  ;;  %1526 = vmatpush3.bf16.msra.mxu1 %v1758_v30 }
  0xc0   : > { %474 = vmatprep.subr.bf16.mxu0 %v1736_v11  ;;  %1527 = vmatprep.subr.bf16.mxu1 %v1759_v31 }
  0xc3   : > { %475 = vmatpush1.bf16.msra.mxu0 %v1738_v12  ;;  %1528 = vmatpush3.bf16.msra.mxu1 %v1760_v32 }
  0xc4   : > { %476 = vmatprep.subr.bf16.mxu0 %v1739_v13  ;;  %1529 = vmatprep.subr.bf16.mxu1 %v1761_v33 }
  0xc7   : > { %477 = vmatpush1.bf16.msra.mxu0 %v1741_v14  ;;  %1530 = vmatpush3.bf16.msra.mxu1 %v1762_v34 }
  0xc8   : > { %478 = vmatprep.subr.bf16.mxu0 %v1742_v15  ;;  %1531 = vmatprep.subr.bf16.mxu1 %v1763_v35 }
  0xcb   : > { %479 = vmatpush1.bf16.msra.mxu0 %v1744_v16  ;;  %1532 = vmatpush3.bf16.msra.mxu1 %v1764_v36 }
  0xcc   : > { %1533 = vmatprep.subr.bf16.mxu1 %v1765_v37 }
  0xce   : > { %497 = vmatmul.mubr.bf16.vlgmr.msra.gmra.mrb[0].mxu0 %v1745_v17 }
  0xcf   : > { %506 = vmatprep.mubr.bf16.mxu0 %v2083_v0  ;;  %1534 = vmatpush3.bf16.msra.mxu1 %v1766_v38 }
  0xd0   : > { %1535 = vmatprep.subr.bf16.mxu1 %v1767_v39 }
  0xd3   : > { %1536 = vmatpush3.bf16.msra.mxu1 %v1768_v40 }
  0xd6   : > { %507 = vmatmul.mubr.bf16.gmra.mrb[4].mxu0 %v1746_v18 }
  0xd7   : > { %516 = vmatprep.mubr.bf16.mxu0 %v2083_v0 }
  0xde   : > { %517 = vmatmul.mubr.bf16.gmra.mrb[8].mxu0 %v1747_v19 }
  0xdf   : > { %526 = vmatprep.mubr.bf16.mxu0 %v2083_v0 }
  0xe6   : > { %527 = vmatmul.mubr.bf16.gmra.mrb[12].mxu0 %v1748_v20 }
  0xe7   : > { %536 = vmatprep.mubr.bf16.mxu0 %v2083_v0 }
  0xee   : > { %537 = vmatmul.mubr.bf16.gmra.mrb[16].mxu0 %v1749_v21 }
  0xef   : > { %546 = vmatprep.mubr.bf16.mxu0 %v2083_v0 }
  0xf6   : > { %547 = vmatmul.mubr.bf16.gmra.mrb[20].mxu0 %v1750_v22 }
  0xf7   : > { %556 = vmatprep.mubr.bf16.mxu0 %v2083_v0 }
  0xfe   : > { %557 = vmatmul.mubr.bf16.gmra.mrb[24].mxu0 %v1751_v23 }
  0xff   : > { %566 = vmatprep.mubr.bf16.mxu0 %v2083_v0 }
 0x106   : > { %567 = vmatmul.mubr.bf16.gmra.mrb[28].mxu0 %v1752_v24 }
 0x1a1   : > { %v498_v41 = vpop.f32.mrb[0].mxu0 }
 0x1a2   : > { %v500_v42 = vpop.f32.mrb[1].mxu0 }
 0x1a3   : > { %v502_v43 = vpop.f32.mrb[2].mxu0 }
 0x1a4   : > { %v577_v44 = vpack.c.bf16 %v502_v43, %v498_v41  ;;  %v504_v45 = vpop.f32.mrb[3].mxu0 }
 0x1a5   : > { %v578_v46 = vpack.c.bf16 %v504_v45, %v500_v42 }
 0x1a6   : > { %v593_v47 = vunpack.c.l.bf16 %v577_v44  ;;  %v595_v48 = vunpack.c.h.bf16 %v577_v44 }
 0x1a7   : > { %v594_v49 = vunpack.c.l.bf16 %v578_v46  ;;  %v2484_v50 = vunpack.c.h.bf16 %v578_v46 }
 0x1a8   : > { %v657_v51 = vmul.f32 0.044715, %v593_v47  ;;  %v659_v52 = vmul.f32 0.044715, %v595_v48  ;;  %v625_v42 = vmul.f32 0.5, %v593_v47  ;;  %v627_v43 = vmul.f32 0.5, %v595_v48 }
 0x1a9   : > { %v508_v53 = vpop.f32.mrb[4].mxu0  ;;  %v658_v54 = vmul.f32 0.044715, %v594_v49  ;;  %v660_v58 = vmul.f32 0.044715, %v2484_v50  ;;  %v626_v41 = vmul.f32 0.5, %v594_v49 }
 0x1aa   : > { %v689_v55 = vmul.f32 %v657_v51, %v593_v47  ;;  %v691_v56 = vmul.f32 %v659_v52, %v595_v48  ;;  %v510_v57 = vpop.f32.mrb[5].mxu0  ;;  %v628_v46 = vmul.f32 0.5, %v2484_v50 }
 0x1ab   : > { %v512_v59 = vpop.f32.mrb[6].mxu0  ;;  %v690_v60 = vmul.f32 %v658_v54, %v594_v49  ;;  %v692_v63 = vmul.f32 %v660_v58, %v2484_v50 }
 0x1ac   : > { %v579_v61 = vpack.c.bf16 %v512_v59, %v508_v53  ;;  %v514_v62 = vpop.f32.mrb[7].mxu0  ;;  %v721_v0 = vmul.f32 %v689_v55, %v593_v47  ;;  %v723_v1 = vmul.f32 %v691_v56, %v595_v48 }
 0x1ad   : > { %v580_v2 = vpack.c.bf16 %v514_v62, %v510_v57  ;;  %v722_v3 = vmul.f32 %v690_v60, %v594_v49  ;;  %v724_v6 = vmul.f32 %v692_v63, %v2484_v50 }
 0x1ae   : > { %v2488_v4 = vunpack.c.l.bf16 %v579_v61  ;;  %v2490_v5 = vunpack.c.h.bf16 %v579_v61  ;;  %v753_v7 = vadd.f32 %v721_v0, %v593_v47  ;;  %v755_v11 = vadd.f32 %v723_v1, %v595_v48 }
 0x1af   : > { %v598_v8 = vunpack.c.l.bf16 %v580_v2  ;;  %v600_v9 = vunpack.c.h.bf16 %v580_v2  ;;  %v754_v10 = vadd.f32 %v722_v3, %v594_v49  ;;  %v756_v14 = vadd.f32 %v724_v6, %v2484_v50 }
 0x1b0   : > { %v661_v12 = vmul.f32 0.044715, %v2488_v4  ;;  %v663_v13 = vmul.f32 0.044715, %v2490_v5  ;;  %v785_v15 = vmul.f32 0.7978846, %v753_v7 }
 0x1b1   : > { %v662_v16 = vmul.f32 0.044715, %v598_v8  ;;  %v664_v17 = vmul.f32 0.044715, %v600_v9  ;;  %v518_v18 = vpop.f32.mrb[8].mxu0  ;;  %v2514_v58 = vmul.f32 0.5, %v598_v8 }
 0x1b2   : > { %v520_v19 = vpop.f32.mrb[9].mxu0  ;;  %v786_v20 = vmul.f32 0.7978846, %v754_v10  ;;  %v788_v21 = vmul.f32 0.7978846, %v756_v14  ;;  %1769 = vtanh.f32 %v785_v15  ;;  %v693_v26 = vmul.f32 %v661_v12, %v2488_v4 }
 0x1b3   : > { %v694_v22 = vmul.f32 %v662_v16, %v598_v8  ;;  %v696_v23 = vmul.f32 %v664_v17, %v600_v9  ;;  %v522_v24 = vpop.f32.mrb[10].mxu0  ;;  %v787_v25 = vmul.f32 0.7978846, %v755_v11  ;;  %v695_v27 = vmul.f32 %v663_v13, %v2490_v5 }
 0x1b4   : > { %v581_v28 = vpack.c.bf16 %v522_v24, %v518_v18  ;;  %v524_v29 = vpop.f32.mrb[11].mxu0  ;;  %1771 = vtanh.f32 %v786_v20  ;;  %v725_v37 = vmul.f32 %v693_v26, %v2488_v4  ;;  %v2516_v60 = vmul.f32 0.5, %v600_v9 }
 0x1b5   : > { %v582_v30 = vpack.c.bf16 %v524_v29, %v520_v19  ;;  %1773 = vtanh.f32 %v788_v21  ;;  %v726_v31 = vmul.f32 %v694_v22, %v598_v8  ;;  %v728_v32 = vmul.f32 %v696_v23, %v600_v9 }
 0x1b6   : > { %1775 = vtanh.f32 %v787_v25  ;;  %v727_v38 = vmul.f32 %v695_v27, %v2490_v5  ;;  %v2505_v44 = vunpack.c.l.bf16 %v581_v28  ;;  %v2508_v53 = vunpack.c.h.bf16 %v581_v28 }
 0x1b7   : > { %v2498_v33 = vunpack.c.l.bf16 %v582_v30  ;;  %v2500_v34 = vunpack.c.h.bf16 %v582_v30  ;;  %v758_v35 = vadd.f32 %v726_v31, %v598_v8  ;;  %v760_v36 = vadd.f32 %v728_v32, %v600_v9 }
 0x1b8   : > { %v757_v56 = vadd.f32 %v725_v37, %v2488_v4  ;;  %v759_v57 = vadd.f32 %v727_v38, %v2490_v5  ;;  %v665_v63 = vmul.f32 0.044715, %v2505_v44  ;;  %v2520_v1 = vmul.f32 0.5, %v2488_v4 }
 0x1b9   : > { %v666_v39 = vmul.f32 0.044715, %v2498_v33  ;;  %v528_v40 = vpop.f32.mrb[12].mxu0  ;;  %v790_v51 = vmul.f32 0.7978846, %v758_v35  ;;  %v2525_v11 = vmul.f32 0.5, %v2490_v5 }
 0x1ba   : > { %v530_v45 = vpop.f32.mrb[13].mxu0  ;;  %v792_v52 = vmul.f32 0.7978846, %v760_v36  ;;  %v668_v54 = vmul.f32 0.044715, %v2500_v34  ;;  %v2528_v12 = vmul.f32 0.5, %v2498_v33  ;;  %v697_v18 = vmul.f32 %v665_v63, %v2505_v44 }
 0x1bb   : > { %v532_v55 = vpop.f32.mrb[14].mxu0  ;;  %v698_v49 = vmul.f32 %v666_v39, %v2498_v33  ;;  %1777 = vtanh.f32 %v790_v51  ;;  %v789_v61 = vmul.f32 0.7978846, %v757_v56  ;;  %v791_v2 = vmul.f32 0.7978846, %v759_v57 }
 0x1bc   : > { %v583_v47 = vpack.c.bf16 %v532_v55, %v528_v40  ;;  %v534_v48 = vpop.f32.mrb[15].mxu0  ;;  %v1770_v59 = vpop.eup %1769  ;;  %1779 = vtanh.f32 %v792_v52  ;;  %v667_v6 = vmul.f32 0.044715, %v2508_v53  ;;  %v700_v7 = vmul.f32 %v668_v54, %v2500_v34 }
 0x1bd   : > { %v584_v50 = vpack.c.bf16 %v534_v48, %v530_v45  ;;  %v849_v0 = vadd.f32 1.0, %v1770_v59  ;;  %1781 = vtanh.f32 %v789_v61  ;;  %v730_v13 = vmul.f32 %v698_v49, %v2498_v33 }
 0x1be   : > { %v1772_v62 = vpop.eup %1771  ;;  %1783 = vtanh.f32 %v791_v2  ;;  %v699_v5 = vmul.f32 %v667_v6, %v2508_v53  ;;  %v2537_v22 = vunpack.c.l.bf16 %v583_v47  ;;  %v732_v25 = vmul.f32 %v700_v7, %v2500_v34 }
 0x1bf   : > { %v1774_v3 = vpop.eup %1773  ;;  %v850_v8 = vadd.f32 1.0, %v1772_v62  ;;  %v2531_v4 = vunpack.c.l.bf16 %v584_v50  ;;  %v881_v17 = vmul.f32 %v849_v0, %v625_v42  ;;  %v2534_v19 = vunpack.c.h.bf16 %v584_v50 }
 0x1c0   : > { %v1776_v10 = vpop.eup %1775  ;;  %v852_v9 = vadd.f32 1.0, %v1774_v3  ;;  %v2540_v26 = vunpack.c.h.bf16 %v583_v47  ;;  %v762_v30 = vadd.f32 %v730_v13, %v2498_v33  ;;  %v764_v36 = vadd.f32 %v732_v25, %v2500_v34 }
 0x1c1   : > { %v538_v14 = vpop.f32.mrb[16].mxu0  ;;  %v882_v15 = vmul.f32 %v850_v8, %v626_v41  ;;  %v851_v16 = vadd.f32 1.0, %v1776_v10  ;;  %v670_v31 = vmul.f32 0.044715, %v2531_v4  ;;  %v672_v38 = vmul.f32 0.044715, %v2534_v19 }
 0x1c2   : > { %v540_v20 = vpop.f32.mrb[17].mxu0  ;;  %v884_v21 = vmul.f32 %v852_v9, %v628_v46  ;;  %v2547_v39 = vmul.f32 0.5, %v2500_v34  ;;  %v794_v40 = vmul.f32 0.7978846, %v762_v30  ;;  %v729_v41 = vmul.f32 %v697_v18, %v2505_v44 }
 0x1c3   : > { %v542_v23 = vpop.f32.mrb[18].mxu0  ;;  %v883_v24 = vmul.f32 %v851_v16, %v627_v43  ;;  %v796_v45 = vmul.f32 0.7978846, %v764_v36  ;;  %v731_v46 = vmul.f32 %v699_v5, %v2508_v53  ;;  %v669_v51 = vmul.f32 0.044715, %v2537_v22 }
 0x1c4   : > { %v585_v27 = vpack.c.bf16 %v542_v23, %v538_v14  ;;  %v544_v28 = vpop.f32.mrb[19].mxu0  ;;  %v914_v29 = vpack.c.bf16 %v884_v21, %v882_v15  ;;  %1785 = vtanh.f32 %v794_v40  ;;  %v671_v34 = vmul.f32 0.044715, %v2540_v26 }
 0x1c5   : > { %v586_v32 = vpack.c.bf16 %v544_v28, %v540_v20  ;;  %v913_v35 = vpack.c.bf16 %v883_v24, %v881_v17  ;;  %v1778_v37 = vpop.eup %1777  ;;  %v702_v56 = vmul.f32 %v670_v31, %v2531_v4  ;;  %1787 = vtanh.f32 %v796_v45 }
 0x1c6   : > { %1089 = vmatprep.mubr.bf16.mxu1 %v914_v29  ;;  %v1780_v42 = vpop.eup %1779  ;;  %v2550_v43 = vunpack.c.l.bf16 %v585_v27  ;;  %v854_v33 = vadd.f32 1.0, %v1778_v37  ;;  %v2554_v52 = vunpack.c.h.bf16 %v585_v27  ;;  %v704_v62 = vmul.f32 %v672_v38, %v2534_v19 }
 0x1c7   : > { %1090 = vmatmul.mubr.bf16.vlgmr.msra.gmra.mrb[0].mxu1 %v913_v35  ;;  %v856_v54 = vadd.f32 1.0, %v1780_v42  ;;  %v1782_v55 = vpop.eup %1781  ;;  %v2559_v47 = vunpack.c.l.bf16 %v586_v32  ;;  %v2561_v48 = vunpack.c.h.bf16 %v586_v32  ;;  %v761_v2 = vadd.f32 %v729_v41, %v2505_v44 }
 0x1c8   : > { %v886_v49 = vmul.f32 %v854_v33, %v2514_v58  ;;  %v853_v61 = vadd.f32 1.0, %v1782_v55  ;;  %v673_v63 = vmul.f32 0.044715, %v2550_v43  ;;  %v763_v3 = vadd.f32 %v731_v46, %v2508_v53  ;;  %v1784_v6 = vpop.eup %1783 }
 0x1c9   : > { %v548_v57 = vpop.f32.mrb[20].mxu0  ;;  %v888_v50 = vmul.f32 %v856_v54, %v2516_v60  ;;  %v675_v58 = vmul.f32 0.044715, %v2554_v52  ;;  %v855_v60 = vadd.f32 1.0, %v1784_v6  ;;  %v793_v14 = vmul.f32 0.7978846, %v761_v2 }
 0x1ca   : > { %v550_v59 = vpop.f32.mrb[21].mxu0  ;;  %v885_v9 = vmul.f32 %v853_v61, %v2520_v1  ;;  %v795_v15 = vmul.f32 0.7978846, %v763_v3  ;;  %v674_v16 = vmul.f32 0.044715, %v2559_v47  ;;  %v2573_v18 = vmul.f32 0.5, %v2505_v44 }
 0x1cb   : > { %v552_v0 = vpop.f32.mrb[22].mxu0  ;;  %v916_v10 = vpack.c.bf16 %v888_v50, %v886_v49  ;;  %v676_v17 = vmul.f32 0.044715, %v2561_v48  ;;  %v734_v20 = vmul.f32 %v702_v56, %v2531_v4  ;;  %v701_v21 = vmul.f32 %v669_v51, %v2537_v22 }
 0x1cc   : > { %v587_v7 = vpack.c.bf16 %v552_v0, %v548_v57  ;;  %v554_v8 = vpop.f32.mrb[23].mxu0  ;;  %v703_v5 = vmul.f32 %v671_v34, %v2540_v26  ;;  %v887_v1 = vmul.f32 %v855_v60, %v2525_v11  ;;  %1789 = vtanh.f32 %v793_v14 }
 0x1cd   : > { %v588_v13 = vpack.c.bf16 %v554_v8, %v550_v59  ;;  %1097 = vmatprep.mubr.bf16.mxu1 %v916_v10  ;;  %v2582_v24 = vmul.f32 0.5, %v2508_v53  ;;  %1791 = vtanh.f32 %v795_v15  ;;  %v736_v25 = vmul.f32 %v704_v62, %v2534_v19 }
 0x1ce   : > { %v2579_v23 = vunpack.c.l.bf16 %v587_v7  ;;  %v2586_v44 = vmul.f32 %v673_v63, %v2550_v43  ;;  %v2589_v27 = vmul.f32 %v675_v58, %v2554_v52  ;;  %v915_v28 = vpack.c.bf16 %v887_v1, %v885_v9  ;;  %v1786_v11 = vpop.eup %1785 }
 0x1cf   : > { %v766_v30 = vadd.f32 %v734_v20, %v2531_v4  ;;  %v706_v31 = vmul.f32 %v674_v16, %v2559_v47  ;;  %v708_v32 = vmul.f32 %v676_v17, %v2561_v48  ;;  %v2594_v53 = vunpack.c.h.bf16 %v587_v7  ;;  %v1788_v37 = vpop.eup %1787 }
 0x1d0   : > { %v768_v36 = vadd.f32 %v736_v25, %v2534_v19  ;;  %v2597_v38 = vunpack.c.l.bf16 %v588_v13  ;;  %v2599_v40 = vunpack.c.h.bf16 %v588_v13  ;;  %1098 = vmatmul.mubr.bf16.gmra.mrb[4].mxu1 %v915_v28  ;;  %v858_v42 = vadd.f32 1.0, %v1786_v11 }
 0x1d1   : > { %v558_v29 = vpop.f32.mrb[24].mxu0  ;;  %v798_v33 = vmul.f32 0.7978846, %v766_v30  ;;  %v677_v45 = vmul.f32 0.044715, %v2579_v23  ;;  %v860_v54 = vadd.f32 1.0, %v1788_v37  ;;  %v733_v57 = vmul.f32 %v701_v21, %v2537_v22 }
 0x1d2   : > { %v560_v35 = vpop.f32.mrb[25].mxu0  ;;  %v800_v55 = vmul.f32 0.7978846, %v768_v36  ;;  %v890_v56 = vmul.f32 %v858_v42, %v2528_v12  ;;  %v679_v61 = vmul.f32 0.044715, %v2594_v53  ;;  %v735_v63 = vmul.f32 %v703_v5, %v2540_v26 }
 0x1d3   : > { %v562_v41 = vpop.f32.mrb[26].mxu0  ;;  %1793 = vtanh.f32 %v798_v33  ;;  %v892_v50 = vmul.f32 %v860_v54, %v2547_v39  ;;  %v765_v0 = vadd.f32 %v733_v57, %v2537_v22  ;;  %v678_v12 = vmul.f32 0.044715, %v2597_v38 }
 0x1d4   : > { %v589_v46 = vpack.c.bf16 %v562_v41, %v558_v29  ;;  %v564_v51 = vpop.f32.mrb[27].mxu0  ;;  %1795 = vtanh.f32 %v800_v55  ;;  %v638_v3 = vmul.f32 0.5, %v2531_v4  ;;  %v640_v6 = vmul.f32 0.5, %v2534_v19 }
 0x1d5   : > { %v590_v34 = vpack.c.bf16 %v564_v51, %v560_v35  ;;  %v918_v2 = vpack.c.bf16 %v892_v50, %v890_v56  ;;  %v2618_v7 = vmul.f32 %v677_v45, %v2579_v23  ;;  %v680_v39 = vmul.f32 0.044715, %v2599_v40 }
 0x1d6   : > { %v2604_v49 = vunpack.c.l.bf16 %v589_v46  ;;  %v2606_v59 = vunpack.c.h.bf16 %v589_v46  ;;  %v1790_v58 = vpop.eup %1789  ;;  %v767_v9 = vadd.f32 %v735_v63, %v2540_v26  ;;  %v797_v19 = vmul.f32 0.7978846, %v765_v0 }
 0x1d7   : > { %v2610_v62 = vunpack.c.l.bf16 %v590_v34  ;;  %v1792_v13 = vpop.eup %1791  ;;  %v2624_v14 = vunpack.c.h.bf16 %v590_v34  ;;  %1105 = vmatprep.mubr.bf16.mxu1 %v918_v2  ;;  %v857_v4 = vadd.f32 1.0, %v1790_v58  ;;  %v2627_v16 = vmul.f32 %v679_v61, %v2594_v53 }
 0x1d8   : > { %v681_v8 = vmul.f32 0.044715, %v2604_v49  ;;  %v683_v60 = vmul.f32 0.044715, %v2606_v59  ;;  %v859_v20 = vadd.f32 1.0, %v1792_v13  ;;  %1797 = vtanh.f32 %v797_v19 }
 0x1d9   : > { %v568_v10 = vpop.f32.mrb[28].mxu0  ;;  %v682_v17 = vmul.f32 0.044715, %v2610_v62  ;;  %v799_v5 = vmul.f32 0.7978846, %v767_v9  ;;  %v889_v1 = vmul.f32 %v857_v4, %v2573_v18  ;;  %v738_v29 = vmul.f32 %v706_v31, %v2559_v47 }
 0x1da   : > { %v570_v15 = vpop.f32.mrb[29].mxu0  ;;  %v891_v30 = vmul.f32 %v859_v20, %v2582_v24  ;;  %v740_v35 = vmul.f32 %v708_v32, %v2561_v48  ;;  %v710_v36 = vmul.f32 %v678_v12, %v2597_v38  ;;  %v684_v37 = vmul.f32 0.044715, %v2624_v14 }
 0x1db   : > { %v572_v21 = vpop.f32.mrb[30].mxu0  ;;  %1799 = vtanh.f32 %v799_v5  ;;  %v637_v41 = vmul.f32 0.5, %v2537_v22  ;;  %v770_v42 = vadd.f32 %v738_v29, %v2559_v47  ;;  %v712_v33 = vmul.f32 %v680_v39, %v2599_v40 }
 0x1dc   : > { %v591_v25 = vpack.c.bf16 %v572_v21, %v568_v10  ;;  %v574_v28 = vpop.f32.mrb[31].mxu0  ;;  %v917_v45 = vpack.c.bf16 %v891_v30, %v889_v1  ;;  %v639_v31 = vmul.f32 0.5, %v2540_v26  ;;  %v772_v24 = vadd.f32 %v740_v35, %v2561_v48 }
 0x1dd   : > { %v592_v11 = vpack.c.bf16 %v574_v28, %v570_v15  ;;  %v1794_v18 = vpop.eup %1793  ;;  %v2642_v51 = vmul.f32 %v681_v8, %v2604_v49  ;;  %v2645_v54 = vmul.f32 0.5, %v2559_v47  ;;  %v2648_v22 = vmul.f32 0.5, %v2561_v48 }
 0x1de   : > { %v1796_v46 = vpop.eup %1795  ;;  %v862_v32 = vadd.f32 1.0, %v1794_v18  ;;  %v715_v55 = vmul.f32 %v683_v60, %v2606_v59  ;;  %v714_v34 = vmul.f32 %v682_v17, %v2610_v62  ;;  %1106 = vmatmul.mubr.bf16.gmra.mrb[8].mxu1 %v917_v45  ;;  %v737_v26 = vmul.f32 %v2586_v44, %v2550_v43 }
 0x1df   : > { %v864_v56 = vadd.f32 1.0, %v1796_v46  ;;  %v716_v57 = vmul.f32 %v684_v37, %v2624_v14  ;;  %v2655_v50 = vunpack.c.l.bf16 %v592_v11  ;;  %v802_v63 = vmul.f32 0.7978846, %v770_v42 }
 0x1e0   : > { %v894_v61 = vmul.f32 %v862_v32, %v638_v3  ;;  %v2657_v47 = vunpack.c.l.bf16 %v591_v25  ;;  %v2659_v0 = vunpack.c.h.bf16 %v592_v11  ;;  %v804_v12 = vmul.f32 0.7978846, %v772_v24 }
 0x1e1   : > { %v896_v48 = vmul.f32 %v864_v56, %v640_v6  ;;  %v2661_v2 = vunpack.c.h.bf16 %v591_v25  ;;  %1801 = vtanh.f32 %v802_v63  ;;  %v739_v58 = vmul.f32 %v2589_v27, %v2554_v52 }
 0x1e2   : > { %v769_v44 = vadd.f32 %v737_v26, %v2550_v43  ;;  %1803 = vtanh.f32 %v804_v12  ;;  %v2667_v8 = vmul.f32 0.5, %v2550_v43  ;;  %v742_v3 = vmul.f32 %v710_v36, %v2597_v38  ;;  %v1798_v10 = vpop.eup %1797 }
 0x1e3   : > { %v920_v39 = vpack.c.bf16 %v896_v48, %v894_v61  ;;  %v686_v9 = vmul.f32 0.044715, %v2655_v50  ;;  %v771_v6 = vadd.f32 %v739_v58, %v2554_v52  ;;  %v744_v60 = vmul.f32 %v712_v33, %v2599_v40 }
 0x1e4   : > { %v801_v13 = vmul.f32 0.7978846, %v769_v44  ;;  %v688_v27 = vmul.f32 0.044715, %v2659_v0  ;;  %v861_v15 = vadd.f32 1.0, %v1798_v10  ;;  %v774_v19 = vadd.f32 %v742_v3, %v2597_v38 }
 0x1e5   : > { %v1800_v4 = vpop.eup %1799  ;;  %1113 = vmatprep.mubr.bf16.mxu1 %v920_v39  ;;  %v741_v43 = vmul.f32 %v2618_v7, %v2579_v23  ;;  %v803_v20 = vmul.f32 0.7978846, %v771_v6  ;;  %v776_v21 = vadd.f32 %v744_v60, %v2599_v40  ;;  %v743_v25 = vmul.f32 %v2627_v16, %v2594_v53 }
 0x1e6   : > { %v863_v17 = vadd.f32 1.0, %v1800_v4  ;;  %1805 = vtanh.f32 %v801_v13  ;;  %v893_v5 = vmul.f32 %v861_v15, %v637_v41  ;;  %v806_v1 = vmul.f32 0.7978846, %v774_v19 }
 0x1e7   : > { %v773_v28 = vadd.f32 %v741_v43, %v2579_v23  ;;  %v685_v29 = vmul.f32 0.044715, %v2657_v47  ;;  %1807 = vtanh.f32 %v803_v20  ;;  %v808_v11 = vmul.f32 0.7978846, %v776_v21 }
 0x1e8   : > { %v895_v30 = vmul.f32 %v863_v17, %v639_v31  ;;  %v687_v35 = vmul.f32 0.044715, %v2661_v2  ;;  %1809 = vtanh.f32 %v806_v1  ;;  %v775_v7 = vadd.f32 %v743_v25, %v2594_v53 }
 0x1e9   : > { %v805_v36 = vmul.f32 0.7978846, %v773_v28  ;;  %1811 = vtanh.f32 %v808_v11  ;;  %v746_v41 = vmul.f32 %v714_v34, %v2610_v62  ;;  %v748_v42 = vmul.f32 %v716_v57, %v2624_v14 }
 0x1ea   : > { %v919_v37 = vpack.c.bf16 %v895_v30, %v893_v5  ;;  %v718_v16 = vmul.f32 %v686_v9, %v2655_v50  ;;  %v720_v18 = vmul.f32 %v688_v27, %v2659_v0  ;;  %v807_v33 = vmul.f32 0.7978846, %v775_v7 }
 0x1eb   : > { %1813 = vtanh.f32 %v805_v36  ;;  %v1802_v45 = vpop.eup %1801  ;;  %v778_v31 = vadd.f32 %v746_v41, %v2610_v62  ;;  %v780_v24 = vadd.f32 %v748_v42, %v2624_v14  ;;  %v745_v46 = vmul.f32 %v2642_v51, %v2604_v49 }
 0x1ec   : > { %1114 = vmatmul.mubr.bf16.gmra.mrb[12].mxu1 %v919_v37  ;;  %v747_v32 = vmul.f32 %v715_v55, %v2606_v59  ;;  %v1804_v34 = vpop.eup %1803  ;;  %v717_v56 = vmul.f32 %v685_v29, %v2657_v47  ;;  %v866_v26 = vadd.f32 1.0, %v1802_v45  ;;  %v643_v57 = vmul.f32 0.5, %v2554_v52 }
 0x1ed   : > { %1815 = vtanh.f32 %v807_v33  ;;  %v868_v61 = vadd.f32 1.0, %v1804_v34  ;;  %v810_v63 = vmul.f32 0.7978846, %v778_v31  ;;  %v812_v48 = vmul.f32 0.7978846, %v780_v24 }
 0x1ee   : > { %v777_v12 = vadd.f32 %v745_v46, %v2604_v49  ;;  %v898_v58 = vmul.f32 %v866_v26, %v2645_v54  ;;  %v779_v44 = vadd.f32 %v747_v32, %v2606_v59  ;;  %v750_v51 = vmul.f32 %v718_v16, %v2655_v50 }
 0x1ef   : > { %v752_v55 = vmul.f32 %v720_v18, %v2659_v0  ;;  %v719_v3 = vmul.f32 %v687_v35, %v2661_v2  ;;  %v900_v10 = vmul.f32 %v868_v61, %v2648_v22  ;;  %1817 = vtanh.f32 %v810_v63 }
 0x1f0   : > { %v1806_v39 = vpop.eup %1805  ;;  %v809_v52 = vmul.f32 0.7978846, %v777_v12  ;;  %1819 = vtanh.f32 %v812_v48  ;;  %v811_v6 = vmul.f32 0.7978846, %v779_v44  ;;  %v782_v13 = vadd.f32 %v750_v51, %v2655_v50 }
 0x1f1   : > { %v865_v9 = vadd.f32 1.0, %v1806_v39  ;;  %v1808_v60 = vpop.eup %1807  ;;  %v922_v54 = vpack.c.bf16 %v900_v10, %v898_v58  ;;  %v646_v4 = vmul.f32 0.5, %v2597_v38  ;;  %v784_v27 = vadd.f32 %v752_v55, %v2659_v0 }
 0x1f2   : > { %1821 = vtanh.f32 %v809_v52  ;;  %v1810_v15 = vpop.eup %1809  ;;  %v867_v19 = vadd.f32 1.0, %v1808_v60  ;;  %v814_v22 = vmul.f32 0.7978846, %v782_v13  ;;  %v749_v5 = vmul.f32 %v717_v56, %v2657_v47 }
 0x1f3   : > { %v897_v43 = vmul.f32 %v865_v9, %v2667_v8  ;;  %1823 = vtanh.f32 %v811_v6  ;;  %v1812_v17 = vpop.eup %1811  ;;  %1121 = vmatprep.mubr.bf16.mxu1 %v922_v54  ;;  %v870_v20 = vadd.f32 1.0, %v1810_v15  ;;  %v816_v21 = vmul.f32 0.7978846, %v784_v27 }
 0x1f4   : > { %v751_v1 = vmul.f32 %v719_v3, %v2661_v2  ;;  %v899_v28 = vmul.f32 %v867_v19, %v643_v57  ;;  %v648_v38 = vmul.f32 0.5, %v2599_v40  ;;  %v872_v29 = vadd.f32 1.0, %v1812_v17 }
 0x1f5   : > { %v1814_v25 = vpop.eup %1813  ;;  %1825 = vtanh.f32 %v814_v22  ;;  %v902_v30 = vmul.f32 %v870_v20, %v646_v4  ;;  %v781_v8 = vadd.f32 %v749_v5, %v2657_v47  ;;  %v645_v18 = vmul.f32 0.5, %v2579_v23 }
 0x1f6   : > { %1827 = vtanh.f32 %v816_v21  ;;  %v921_v35 = vpack.c.bf16 %v899_v28, %v897_v43  ;;  %v904_v7 = vmul.f32 %v872_v29, %v648_v38  ;;  %v869_v36 = vadd.f32 1.0, %v1814_v25 }
 0x1f7   : > { %v1816_v11 = vpop.eup %1815  ;;  %v783_v37 = vadd.f32 %v751_v1, %v2661_v2  ;;  %v813_v42 = vmul.f32 0.7978846, %v781_v8  ;;  %v647_v40 = vmul.f32 0.5, %v2594_v53  ;;  %v650_v31 = vmul.f32 0.5, %v2610_v62 }
 0x1f8   : > { %v871_v41 = vadd.f32 1.0, %v1816_v11  ;;  %1122 = vmatmul.mubr.bf16.gmra.mrb[16].mxu1 %v921_v35  ;;  %v924_v16 = vpack.c.bf16 %v904_v7, %v902_v30  ;;  %v901_v46 = vmul.f32 %v869_v36, %v645_v18  ;;  %v652_v26 = vmul.f32 0.5, %v2624_v14 }
 0x1f9   : > { %v815_v33 = vmul.f32 0.7978846, %v783_v37  ;;  %v1818_v45 = vpop.eup %1817  ;;  %1829 = vtanh.f32 %v813_v42  ;;  %v654_v51 = vmul.f32 0.5, %v2655_v50  ;;  %v649_v39 = vmul.f32 0.5, %v2604_v49 }
 0x1fa   : > { %v1820_v24 = vpop.eup %1819  ;;  %1129 = vmatprep.mubr.bf16.mxu1 %v924_v16  ;;  %v903_v32 = vmul.f32 %v871_v41, %v647_v40  ;;  %v874_v34 = vadd.f32 1.0, %v1818_v45  ;;  %v651_v3 = vmul.f32 0.5, %v2606_v59  ;;  %v656_v14 = vmul.f32 0.5, %v2659_v0 }
 0x1fb   : > { %1831 = vtanh.f32 %v815_v33  ;;  %v876_v57 = vadd.f32 1.0, %v1820_v24  ;;  %v653_v49 = vmul.f32 0.5, %v2657_v47  ;;  %v655_v59 = vmul.f32 0.5, %v2661_v2 }
 0x1fc   : > { %v1822_v56 = vpop.eup %1821  ;;  %v906_v63 = vmul.f32 %v874_v34, %v650_v31  ;;  %v923_v53 = vpack.c.bf16 %v903_v32, %v901_v46 }
 0x1fd   : > { %v1824_v61 = vpop.eup %1823  ;;  %v908_v23 = vmul.f32 %v876_v57, %v652_v26  ;;  %v873_v12 = vadd.f32 1.0, %v1822_v56 }
 0x1fe   : > { %v875_v58 = vadd.f32 1.0, %v1824_v61 }
 0x1ff   : > { %v1826_v48 = vpop.eup %1825  ;;  %v926_v62 = vpack.c.bf16 %v908_v23, %v906_v63  ;;  %v905_v9 = vmul.f32 %v873_v12, %v649_v39 }
 0x200   : > { %v1828_v44 = vpop.eup %1827  ;;  %v878_v55 = vadd.f32 1.0, %v1826_v48  ;;  %1130 = vmatmul.mubr.bf16.gmra.mrb[20].mxu1 %v923_v53  ;;  %v907_v6 = vmul.f32 %v875_v58, %v651_v3 }
 0x201   : > { %v880_v10 = vadd.f32 1.0, %v1828_v44  ;;  %1137 = vmatprep.mubr.bf16.mxu1 %v926_v62 }
 0x202   : > { %v910_v52 = vmul.f32 %v878_v55, %v654_v51  ;;  %v925_v27 = vpack.c.bf16 %v907_v6, %v905_v9 }
 0x203   : > { %v912_v13 = vmul.f32 %v880_v10, %v656_v14  ;;  %v1830_v60 = vpop.eup %1829 }
 0x204   : > { %v877_v15 = vadd.f32 1.0, %v1830_v60 }
 0x205   : > { %v1832_v54 = vpop.eup %1831  ;;  %v928_v4 = vpack.c.bf16 %v912_v13, %v910_v52 }
 0x206   : > { %v879_v50 = vadd.f32 1.0, %v1832_v54  ;;  %v909_v0 = vmul.f32 %v877_v15, %v653_v49 }
 0x208   : > { %1138 = vmatmul.mubr.bf16.gmra.mrb[24].mxu1 %v925_v27  ;;  %v911_v19 = vmul.f32 %v879_v50, %v655_v59 }
 0x209   : > { %1145 = vmatprep.mubr.bf16.mxu1 %v928_v4 }
 0x20a   : > { %v927_v43 = vpack.c.bf16 %v911_v19, %v909_v0 }
 0x210   : > { %1146 = vmatmul.mubr.bf16.gmra.mrb[28].mxu1 %v927_v43 }
 0x29a   : > { %v1537_v22 = vpop.f32.mrb[0].mxu1 }
 0x29b   : > { %v1538_v17 = vpop.f32.mrb[1].mxu1 }
 0x29c   : > { %v1539_v20 = vadd.f32 %v1538_v17, %v1537_v22  ;;  %v1540_v21 = vpop.f32.mrb[2].mxu1 }
 0x29d   : > { %v1541_v5 = vpop.f32.mrb[3].mxu1 }
 0x29e   : > { %v1542_v1 = vadd.f32 %v1541_v5, %v1540_v21 }
 0x2a0   : > { %v1477_v25 = vpack.c.bf16 %v1542_v1, %v1539_v20 }
 0x2a2   : > { %1478 = vst [vmem:[%s2723_s10] sm:$0xff] %v1477_v25  }
 0x2a3   : > { %v1543_v47 = vpop.f32.mrb[4].mxu1 }
 0x2a4   : > { %v1544_v2 = vpop.f32.mrb[5].mxu1 }
 0x2a5   : > { %v1545_v28 = vadd.f32 %v1544_v2, %v1543_v47  ;;  %v1546_v38 = vpop.f32.mrb[6].mxu1 }
 0x2a6   : > { %v1547_v29 = vpop.f32.mrb[7].mxu1 }
 0x2a7   : > { %v1548_v30 = vadd.f32 %v1547_v29, %v1546_v38 }
 0x2a9   : > { %v1482_v8 = vpack.c.bf16 %v1548_v30, %v1545_v28 }
 0x2ab   : > { %1514 = vst [vmem:[%s2723_s10 + $0x8] sm:$0xff] %v1482_v8  }
 0x2b1   : > { %v1549_v11 = vpop.f32.mrb[8].mxu1 }
 0x2b2   : > { %v1550_v35 = vpop.f32.mrb[9].mxu1 }
 0x2b3   : > { %v1551_v7 = vadd.f32 %v1550_v35, %v1549_v11  ;;  %v1552_v36 = vpop.f32.mrb[10].mxu1 }
 0x2b4   : > { %v1553_v37 = vpop.f32.mrb[11].mxu1 }
 0x2b5   : > { %v1554_v41 = vadd.f32 %v1553_v37, %v1552_v36 }
 0x2b7   : > { %v1487_v42 = vpack.c.bf16 %v1554_v41, %v1551_v7 }
 0x2b9   : > { %1515 = vst [vmem:[%s2723_s10 + $0x10] sm:$0xff] %v1487_v42  }
 0x2bf   : > { %v1555_v16 = vpop.f32.mrb[12].mxu1 }
 0x2c0   : > { %v1556_v18 = vpop.f32.mrb[13].mxu1 }
 0x2c1   : > { %v1557_v40 = vadd.f32 %v1556_v18, %v1555_v16  ;;  %v1558_v33 = vpop.f32.mrb[14].mxu1 }
 0x2c2   : > { %v1559_v45 = vpop.f32.mrb[15].mxu1 }
 0x2c3   : > { %v1560_v31 = vadd.f32 %v1559_v45, %v1558_v33 }
 0x2c5   : > { %v1492_v24 = vpack.c.bf16 %v1560_v31, %v1557_v40 }
 0x2c7   : > { %1516 = vst [vmem:[%s2723_s10 + $0x18] sm:$0xff] %v1492_v24  }
 0x2cb   : > { %v1561_v46 = vpop.f32.mrb[16].mxu1 }
 0x2cc   : > { %v1562_v32 = vpop.f32.mrb[17].mxu1 }
 0x2cd   : > { %v1563_v34 = vadd.f32 %v1562_v32, %v1561_v46  ;;  %v1564_v56 = vpop.f32.mrb[18].mxu1 }
 0x2ce   : > { %v1565_v26 = vpop.f32.mrb[19].mxu1 }
 0x2cf   : > { %v1566_v57 = vadd.f32 %v1565_v26, %v1564_v56 }
 0x2d1   : > { %v1497_v61 = vpack.c.bf16 %v1566_v57, %v1563_v34 }
 0x2d3   : > { %1517 = vst [vmem:[%s2723_s10 + $0x20] sm:$0xff] %v1497_v61   ;;  %v1567_v63 = vpop.f32.mrb[20].mxu1 }
 0x2d4   : > { %v1568_v23 = vpop.f32.mrb[21].mxu1 }
 0x2d5   : > { %v1569_v48 = vadd.f32 %v1568_v23, %v1567_v63  ;;  %v1570_v53 = vpop.f32.mrb[22].mxu1 }
 0x2d6   : > { %v1571_v12 = vpop.f32.mrb[23].mxu1 }
 0x2d7   : > { %v1572_v58 = vadd.f32 %v1571_v12, %v1570_v53 }
 0x2d9   : > { %v1502_v44 = vpack.c.bf16 %v1572_v58, %v1569_v48 }
 0x2db   : > { %1518 = vst [vmem:[%s2723_s10 + $0x28] sm:$0xff] %v1502_v44   ;;  %v1573_v62 = vpop.f32.mrb[24].mxu1 }
 0x2dc   : > { %v1574_v51 = vpop.f32.mrb[25].mxu1 }
 0x2dd   : > { %v1575_v55 = vadd.f32 %v1574_v51, %v1573_v62  ;;  %v1576_v39 = vpop.f32.mrb[26].mxu1 }
 0x2de   : > { %v1577_v3 = vpop.f32.mrb[27].mxu1 }
 0x2df   : > { %v1578_v14 = vadd.f32 %v1577_v3, %v1576_v39 }
 0x2e1   : > { %v1507_v10 = vpack.c.bf16 %v1578_v14, %v1575_v55 }
 0x2e3   : > { %1519 = vst [vmem:[%s2723_s10 + $0x30] sm:$0xff] %v1507_v10   ;;  %v1579_v52 = vpop.f32.mrb[28].mxu1 }
 0x2e4   : > { %v1580_v9 = vpop.f32.mrb[29].mxu1 }
 0x2e5   : > { %v1581_v6 = vadd.f32 %v1580_v9, %v1579_v52  ;;  %v1582_v13 = vpop.f32.mrb[30].mxu1 }
 0x2e6   : > { %v1583_v60 = vpop.f32.mrb[31].mxu1 }
 0x2e7   : > { %v1584_v54 = vadd.f32 %v1583_v60, %v1582_v13 }
 0x2e9   : > { %v1512_v4 = vpack.c.bf16 %v1584_v54, %v1581_v6 }
 0x2eb   : > { %1520 = vst [vmem:[%s2723_s10 + $0x38] sm:$0xff] %v1512_v4  }
 0x2ec   : > { %1946 = shalt.err (!%p1943_p2)
}
 0x2ed   : > { %s1947_s22 = scalar_lea.hbm %s2739_s17, 1024  ;;  %s1951_s20 = scalar_lea.hbm %s2855_s13, 3072 }
 0x2ee   : > { %p1948_p8 = scmp.ne.s32.totalorder %s2739_s17, %s1947_s22  ;;  %p1952_p5 = scmp.lt.u32.totalorder %s2739_s17, %s2855_s13 }
 0x2ef   : > { %p1953_p1 = scmp.lt.u32.totalorder %s1951_s20, %s1947_s22  ;;  %p1955_p0 = scmp.lt.u32.totalorder %s1947_s22, %s2739_s17 }
 0x2f0   : > { %p1949_p10 = pnand %p1948_p8, %p2856_p6 }
 0x2f1   : > { %p1954_p13 = por %p1953_p1, %p1952_p5 }
 0x2f2   : > { %p1950_p11 = pneg %p1949_p10 }
 0x2f3   : > { %p1956_p12 = por %p1955_p0, %p1954_p13 }
 0x2f5   : > { %p1957_p4 = pnand %p1956_p12, %p1950_p11 }
 0x2f7   : > { %1960 = shalt.err (!%p1957_p4)
}
 0x2f8   : > { %s2085_s10 = smov 64   ;;  %s2086_s21 = smov 4  }
 0x2f9   : > { %1595 = dma.vmem_to_hbm [thread:$0]  (%p2856_p6), %s2734_s16, 1024, %s2739_s17, %s1235_s0, %s2085_s10, %s2085_s10, %s2086_s21  }
 0x2fa PF: > { %s2857_s28 = sld [smem:[#allocation24_spill]]  ;;  %p1616_p9 = scmp.ge.s32.totalorder %s2073_s9, 2 }
 0x2fb   : > { %s1263_s2 = sand.u32 1, %s2053_s30  }
 0x2fc   : > { %s1264_s6 = scalar_lea.sflag [#allocation6], %s1263_s2 }
 0x300   : > { %p2858_p3 = scmp.ne.s32.totalorder %s2857_s28, 0 }
 0x302   : > { %p1612_p7 = pnand %p1616_p9, %p2858_p3 }
 0x304   : > { %2024 = dma.done.wait (!%p1612_p7), %s1264_s6, 1024  }
 0x305   : > { %2026 = vsyncadd (!%p1612_p7), %s1264_s6, 4294966272  ;;  %s27_s9 = sadd.s32 1, %s2073_s9   ;;  %s2859_s19 = sld [smem:[#allocation20_spill]] }
 0x306   : > { %p24_p2 = scmp.ge.s32.totalorder %s27_s9, 5   ;;  %s2860_s0 = sld [smem:[#allocation22_spill]] }
 0x307   : > { %s2861_s16 = sld [smem:[#allocation21_spill]]  ;;  %s2862_s6 = sld [smem:[#allocation23_spill]] }
 0x308   : > { %s2863_s25 = smov %s2033_s26  ;;  %s2864_s26 = smov %s2037_s27 }
 0x309   : > { %s2865_s27 = smov %s2371_s4  ;;  %s2866_s28 = smov %s2045_s29 }
 0x30a   : > { %s2868_s30 = smov %s2057_s5  ;;  %s2870_s7 = smov %s2069_s8 }
 0x30b   : > { %s2867_s29 = smov %s2859_s19  ;;  %s2871_s8 = smov %s2873_s11 }
 0x30c   :  { %26 = sbr.rel (!%p24_p2) target bundleno = 24 (0x18), region = 101 }
 0x30d   : > { %s2869_s5 = smov %s2861_s16 }
 0x313   :  { %1269 = vsyncpa [#allocation5], 1 }
 0x314   :  { %1271 = vsyncpa [#allocation5 + $0x1], 1 }
 0x315   :  { %1272 = vsyncpa [#allocation8], 1 }
 0x316   :  { %1274 = vsyncpa [#allocation8 + $0x1], 1 }
 0x317   :  { %1275 = vsyncpa [#allocation6], 1 }
 0x318   :  { %1277 = vsyncpa [#allocation6 + $0x1], 1 }

</bundles_post_ra>
